<compile_context>
chip_gen: v6e
topology: v6e:2x2x1
jax: 0.10.0
libtpu: 0.0.40
codegen_flags: <defaults>
</compile_context>

<pallas_src>
import jax
import jax.numpy as jnp
from jax import lax
from jax.experimental import pallas as pl
from jax.experimental.pallas import tpu as pltpu

HIDDEN = 100          # logical hidden width (matches the PyTorch module)
HIDDEN_PAD = 128      # lane-dense padded hidden width used inside the kernel
DEFAULT_TB = 2048     # batch tile (rows per grid step)


def _critic_kernel(s_ref, a_ref, w1s_ref, w1a_ref, b1_ref,
                   w2_ref, b2_ref, w3r_ref, b3_ref, o_ref):
    # ---- Layer 1: fused concat -> split matmul (bf16 operands, f32 accum) ----
    s_b = s_ref[...].astype(jnp.bfloat16)
    a_b = a_ref[...].astype(jnp.bfloat16)
    h1 = (jnp.dot(s_b, w1s_ref[...], preferred_element_type=jnp.float32)
          + jnp.dot(a_b, w1a_ref[...], preferred_element_type=jnp.float32)
          + b1_ref[...])
    h1 = jnp.maximum(h1, 0.0)                                   # [TB, Hp] f32

    # ---- Layer 2: [TB, Hp] @ [Hp, Hp], lane-dense 128-wide MXU tile ----
    h2 = (jnp.dot(h1.astype(jnp.bfloat16), w2_ref[...],
                  preferred_element_type=jnp.float32)
          + b2_ref[...])
    h2 = jnp.maximum(h2, 0.0)                                   # [TB, Hp] f32

    # ---- Output layer, lane-dense: [1, Hp] x [TB, Hp] contracted on Hp -> [1, TB] ----
    out_row = lax.dot_general(
        w3r_ref[...], h2.astype(jnp.bfloat16),
        dimension_numbers=(((1,), (1,)), ((), ())),
        preferred_element_type=jnp.float32) + b3_ref[...]
    o_ref[...] = out_row.astype(o_ref.dtype)                    # [1, TB]


def init_params(key, nS, nA):
    """Logical (PyTorch-equivalent) parameters, stored as [in, out] weights.
    Init matches nn.Linear default: U(-1/sqrt(fan_in), 1/sqrt(fan_in))."""
    def linear(k, fan_in, fan_out):
        kw, kb = jax.random.split(k)
        bound = 1.0 / jnp.sqrt(fan_in)
        w = jax.random.uniform(kw, (fan_in, fan_out), jnp.float32, -bound, bound)
        b = jax.random.uniform(kb, (1, fan_out), jnp.float32, -bound, bound)
        return w, b

    k1, k2, k3 = jax.random.split(key, 3)
    w1, b1 = linear(k1, nS + nA, HIDDEN)
    w2, b2 = linear(k2, HIDDEN, HIDDEN)
    w3, b3 = linear(k3, HIDDEN, 1)
    return {"w1": w1, "b1": b1, "w2": w2, "b2": b2, "w3": w3, "b3": b3}


def prepare_kernel_params(params, nS):
    """Split W1 into (s, a) halves, zero-pad hidden 100 -> 128, cast weights to
    bf16 (f32 accumulation keeps error ~1e-2-level), keep biases in f32.
    Pad entries are exactly zero, so the padded lanes stay zero end-to-end."""
    H, Hp = HIDDEN, HIDDEN_PAD
    pad_h = Hp - H
    w1, b1 = params["w1"], params["b1"]
    w2, b2 = params["w2"], params["b2"]
    w3, b3 = params["w3"], params["b3"]

    w1s = jnp.pad(w1[:nS], ((0, 0), (0, pad_h))).astype(jnp.bfloat16)   # [nS, Hp]
    w1a = jnp.pad(w1[nS:], ((0, 0), (0, pad_h))).astype(jnp.bfloat16)   # [nA, Hp]
    b1p = jnp.pad(b1, ((0, 0), (0, pad_h)))                             # [1, Hp] f32
    w2p = jnp.pad(w2, ((0, pad_h), (0, pad_h))).astype(jnp.bfloat16)    # [Hp, Hp]
    b2p = jnp.pad(b2, ((0, 0), (0, pad_h)))                             # [1, Hp] f32
    w3r = jnp.pad(w3.T, ((0, 0), (0, pad_h))).astype(jnp.bfloat16)      # [1, Hp]
    return {"w1s": w1s, "w1a": w1a, "b1": b1p,
            "w2": w2p, "b2": b2p, "w3r": w3r, "b3": b3}                 # b3: [1,1] f32


def critic_forward(s, a, kparams, *, tb=DEFAULT_TB):
    """Pallas forward pass. s: [B, nS] f32, a: [B, nA] f32 -> [B, 1] f32."""
    B, nS = s.shape
    nA = a.shape[1]

    TB = min(tb, B)
    if TB < B:
        # When actually tiling, keep the tile lane/sublane aligned
        # (output block lane dim must be a multiple of 128).
        TB = max(128, (TB // 128) * 128)
    grid = (pl.cdiv(B, TB),)       # no wrapper pad: Pallas masks the edge block

    const = lambda arr: pl.BlockSpec(arr.shape, lambda i: (0,) * arr.ndim)

    out = pl.pallas_call(
        _critic_kernel,
        out_shape=jax.ShapeDtypeStruct((1, B), jnp.float32),
        grid=grid,
        in_specs=[
            pl.BlockSpec((TB, nS), lambda i: (i, 0)),      # s tile (pipelined)
            pl.BlockSpec((TB, nA), lambda i: (i, 0)),      # a tile (pipelined)
            const(kparams["w1s"]), const(kparams["w1a"]), const(kparams["b1"]),
            const(kparams["w2"]), const(kparams["b2"]),
            const(kparams["w3r"]), const(kparams["b3"]),
        ],
        out_specs=pl.BlockSpec((1, TB), lambda i: (0, i)), # lane-dense output row
        compiler_params=pltpu.CompilerParams(
            dimension_semantics=("parallel",)),
    )(s, a, kparams["w1s"], kparams["w1a"], kparams["b1"],
      kparams["w2"], kparams["b2"], kparams["w3r"], kparams["b3"])

    return out.reshape(B, 1)       # contiguous reshape, free


def critic_ref(s, a, params):
    """Pure-JAX f32 reference (unpadded, concatenated) for correctness check."""
    x = jnp.concatenate([s, a], axis=1)
    x = jnp.maximum(x @ params["w1"] + params["b1"], 0.0)
    x = jnp.maximum(x @ params["w2"] + params["b2"], 0.0)
    return x @ params["w3"] + params["b3"]


if __name__ == "__main__":
    nS, nA, B = 16, 4, 8
    key = jax.random.PRNGKey(0)
    kp, ks, ka = jax.random.split(key, 3)

    params = init_params(kp, nS, nA)
    kparams = prepare_kernel_params(params, nS)

    # Small-batch check (single block, full-extent batch dim).
    s = jax.random.normal(ks, (B, nS), jnp.float32)
    a = jax.random.normal(ka, (B, nA), jnp.float32)
    out = jax.block_until_ready(critic_forward(s, a, kparams))
    ref = critic_ref(s, a, params)
    assert out.shape == (B, 1), out.shape
    # bf16 matmul operands (f32 accumulation) -> tolerance relaxed per review.
    assert jnp.allclose(out, ref, atol=3e-2, rtol=3e-2), \
        float(jnp.max(jnp.abs(out - ref)))

    # Larger batch exercising the tiled/pipelined grid path with a partial
    # edge block (1000 rows, TB=256 -> 4 grid steps, last one masked).
    B2 = 1000
    s2 = jax.random.normal(jax.random.PRNGKey(1), (B2, nS), jnp.float32)
    a2 = jax.random.normal(jax.random.PRNGKey(2), (B2, nA), jnp.float32)
    out2 = jax.block_until_ready(critic_forward(s2, a2, kparams, tb=256))
    ref2 = critic_ref(s2, a2, params)
    assert out2.shape == (B2, 1), out2.shape
    assert jnp.allclose(out2, ref2, atol=3e-2, rtol=3e-2), \
        float(jnp.max(jnp.abs(out2 - ref2)))

    # Default (large) tile path: B < TB collapses to a single full-extent block.
    out3 = jax.block_until_ready(critic_forward(s2, a2, kparams))
    assert jnp.allclose(out3, ref2, atol=3e-2, rtol=3e-2)

    print("KERNEL_OK")
</pallas_src>

<mosaic_0001>
module attributes {stable_mosaic.version = 11 : i64} {
  func.func @_critic_kernel(%arg0: i32, %arg1: memref<8x16xf32, #tpu.memory_space<vmem>>, %arg2: memref<8x4xf32, #tpu.memory_space<vmem>>, %arg3: memref<16x128xbf16, #tpu.memory_space<vmem>>, %arg4: memref<4x128xbf16, #tpu.memory_space<vmem>>, %arg5: memref<1x128xf32, #tpu.memory_space<vmem>>, %arg6: memref<128x128xbf16, #tpu.memory_space<vmem>>, %arg7: memref<1x128xf32, #tpu.memory_space<vmem>>, %arg8: memref<1x128xbf16, #tpu.memory_space<vmem>>, %arg9: memref<1x1xf32, #tpu.memory_space<vmem>>, %arg10: memref<1x8xf32, #tpu.memory_space<vmem>>) attributes {dimension_semantics = [#tpu.dimension_semantics<parallel>], iteration_bounds = array<i64: 1>, scalar_prefetch = 0 : i64, scratch_operands = 0 : i64, tpu.core_type = #tpu.core_type<tc>, window_params = [{transform_indices = @transform_0, window_bounds = array<i64: 8, 16>}, {transform_indices = @transform_1, window_bounds = array<i64: 8, 4>}, {pipeline_mode = #tpu.pipeline_mode<synchronous>, transform_indices = @transform_2, window_bounds = array<i64: 16, 128>}, {pipeline_mode = #tpu.pipeline_mode<synchronous>, transform_indices = @transform_3, window_bounds = array<i64: 4, 128>}, {pipeline_mode = #tpu.pipeline_mode<synchronous>, transform_indices = @transform_4, window_bounds = array<i64: 1, 128>}, {pipeline_mode = #tpu.pipeline_mode<synchronous>, transform_indices = @transform_5, window_bounds = array<i64: 128, 128>}, {pipeline_mode = #tpu.pipeline_mode<synchronous>, transform_indices = @transform_6, window_bounds = array<i64: 1, 128>}, {pipeline_mode = #tpu.pipeline_mode<synchronous>, transform_indices = @transform_7, window_bounds = array<i64: 1, 128>}, {pipeline_mode = #tpu.pipeline_mode<synchronous>, transform_indices = @transform_8, window_bounds = array<i64: 1, 1>}, {transform_indices = @transform_9, window_bounds = array<i64: 1, 8>}]} {
    %c0 = arith.constant 0 : index
    %c0_0 = arith.constant 0 : index
    %0 = vector.load %arg1[%c0, %c0_0] : memref<8x16xf32, #tpu.memory_space<vmem>>, vector<8x16xf32>
    %1 = arith.truncf %0 : vector<8x16xf32> to vector<8x16xbf16>
    %c0_1 = arith.constant 0 : index
    %c0_2 = arith.constant 0 : index
    %2 = vector.load %arg2[%c0_1, %c0_2] : memref<8x4xf32, #tpu.memory_space<vmem>>, vector<8x4xf32>
    %3 = arith.truncf %2 : vector<8x4xf32> to vector<8x4xbf16>
    %c0_3 = arith.constant 0 : index
    %c0_4 = arith.constant 0 : index
    %4 = vector.load %arg3[%c0_3, %c0_4] : memref<16x128xbf16, #tpu.memory_space<vmem>>, vector<16x128xbf16>
    %cst = arith.constant dense<0.000000e+00> : vector<8x128xf32>
    %5 = tpu.matmul %1, %4, %cst {dimension_numbers = #tpu.dot_dimension_numbers<[1], [0], [0], [1], [0, 0, 1, 1], [], []>} : vector<8x16xbf16>, vector<16x128xbf16>, vector<8x128xf32> -> vector<8x128xf32>
    %c0_5 = arith.constant 0 : index
    %c0_6 = arith.constant 0 : index
    %6 = vector.load %arg4[%c0_5, %c0_6] : memref<4x128xbf16, #tpu.memory_space<vmem>>, vector<4x128xbf16>
    %cst_7 = arith.constant dense<0.000000e+00> : vector<8x128xf32>
    %7 = tpu.matmul %3, %6, %cst_7 {dimension_numbers = #tpu.dot_dimension_numbers<[1], [0], [0], [1], [0, 0, 1, 1], [], []>} : vector<8x4xbf16>, vector<4x128xbf16>, vector<8x128xf32> -> vector<8x128xf32>
    %8 = arith.addf %5, %7 : vector<8x128xf32>
    %c0_8 = arith.constant 0 : index
    %c0_9 = arith.constant 0 : index
    %9 = vector.load %arg5[%c0_8, %c0_9] : memref<1x128xf32, #tpu.memory_space<vmem>>, vector<1x128xf32>
    %10 = vector.broadcast %9 : vector<1x128xf32> to vector<8x128xf32>
    %11 = arith.addf %8, %10 : vector<8x128xf32>
    %cst_10 = arith.constant 0.000000e+00 : f32
    %12 = vector.broadcast %cst_10 : f32 to vector<8x128xf32>
    %13 = arith.maximumf %11, %12 : vector<8x128xf32>
    %14 = arith.truncf %13 : vector<8x128xf32> to vector<8x128xbf16>
    %c0_11 = arith.constant 0 : index
    %c0_12 = arith.constant 0 : index
    %15 = vector.load %arg6[%c0_11, %c0_12] : memref<128x128xbf16, #tpu.memory_space<vmem>>, vector<128x128xbf16>
    %cst_13 = arith.constant dense<0.000000e+00> : vector<8x128xf32>
    %16 = tpu.matmul %14, %15, %cst_13 {dimension_numbers = #tpu.dot_dimension_numbers<[1], [0], [0], [1], [0, 0, 1, 1], [], []>} : vector<8x128xbf16>, vector<128x128xbf16>, vector<8x128xf32> -> vector<8x128xf32>
    %c0_14 = arith.constant 0 : index
    %c0_15 = arith.constant 0 : index
    %17 = vector.load %arg7[%c0_14, %c0_15] : memref<1x128xf32, #tpu.memory_space<vmem>>, vector<1x128xf32>
    %18 = vector.broadcast %17 : vector<1x128xf32> to vector<8x128xf32>
    %19 = arith.addf %16, %18 : vector<8x128xf32>
    %cst_16 = arith.constant 0.000000e+00 : f32
    %20 = vector.broadcast %cst_16 : f32 to vector<8x128xf32>
    %21 = arith.maximumf %19, %20 : vector<8x128xf32>
    %c0_17 = arith.constant 0 : index
    %c0_18 = arith.constant 0 : index
    %22 = vector.load %arg8[%c0_17, %c0_18] : memref<1x128xbf16, #tpu.memory_space<vmem>>, vector<1x128xbf16>
    %23 = arith.truncf %21 : vector<8x128xf32> to vector<8x128xbf16>
    %cst_19 = arith.constant dense<0.000000e+00> : vector<1x8xf32>
    %24 = tpu.matmul %22, %23, %cst_19 {dimension_numbers = #tpu.dot_dimension_numbers<[1], [1], [0], [0], [0, 0, 1, 0], [], []>} : vector<1x128xbf16>, vector<8x128xbf16>, vector<1x8xf32> -> vector<1x8xf32>
    %c0_20 = arith.constant 0 : index
    %c0_21 = arith.constant 0 : index
    %25 = vector.load %arg9[%c0_20, %c0_21] : memref<1x1xf32, #tpu.memory_space<vmem>>, vector<1x1xf32>
    %26 = vector.broadcast %25 : vector<1x1xf32> to vector<1x8xf32>
    %27 = arith.addf %24, %26 : vector<1x8xf32>
    %c0_22 = arith.constant 0 : index
    %c0_23 = arith.constant 0 : index
    %28 = vector.load %arg10[%c0_22, %c0_23] : memref<1x8xf32, #tpu.memory_space<vmem>>, vector<1x8xf32>
    tpu.vector_store %arg10[%c0_22, %c0_23], %27 {strides = array<i32>} : memref<1x8xf32, #tpu.memory_space<vmem>>, vector<1x8xf32>,
    return
  }
  func.func @transform_0(%arg0: i32) -> (i32, i32) {
    %c0_i32 = arith.constant 0 : i32
    %c0_i32_0 = arith.constant 0 : i32
    return %arg0, %c0_i32 : i32, i32
  }
  func.func @transform_1(%arg0: i32) -> (i32, i32) {
    %c0_i32 = arith.constant 0 : i32
    %c0_i32_0 = arith.constant 0 : i32
    return %arg0, %c0_i32 : i32, i32
  }
  func.func @transform_2(%arg0: i32) -> (i32, i32) {
    %c0_i32 = arith.constant 0 : i32
    %c0_i32_0 = arith.constant 0 : i32
    %c0_i32_1 = arith.constant 0 : i32
    return %c0_i32, %c0_i32_0 : i32, i32
  }
  func.func @transform_3(%arg0: i32) -> (i32, i32) {
    %c0_i32 = arith.constant 0 : i32
    %c0_i32_0 = arith.constant 0 : i32
    %c0_i32_1 = arith.constant 0 : i32
    return %c0_i32, %c0_i32_0 : i32, i32
  }
  func.func @transform_4(%arg0: i32) -> (i32, i32) {
    %c0_i32 = arith.constant 0 : i32
    %c0_i32_0 = arith.constant 0 : i32
    %c0_i32_1 = arith.constant 0 : i32
    return %c0_i32, %c0_i32_0 : i32, i32
  }
  func.func @transform_5(%arg0: i32) -> (i32, i32) {
    %c0_i32 = arith.constant 0 : i32
    %c0_i32_0 = arith.constant 0 : i32
    %c0_i32_1 = arith.constant 0 : i32
    return %c0_i32, %c0_i32_0 : i32, i32
  }
  func.func @transform_6(%arg0: i32) -> (i32, i32) {
    %c0_i32 = arith.constant 0 : i32
    %c0_i32_0 = arith.constant 0 : i32
    %c0_i32_1 = arith.constant 0 : i32
    return %c0_i32, %c0_i32_0 : i32, i32
  }
  func.func @transform_7(%arg0: i32) -> (i32, i32) {
    %c0_i32 = arith.constant 0 : i32
    %c0_i32_0 = arith.constant 0 : i32
    %c0_i32_1 = arith.constant 0 : i32
    return %c0_i32, %c0_i32_0 : i32, i32
  }
  func.func @transform_8(%arg0: i32) -> (i32, i32) {
    %c0_i32 = arith.constant 0 : i32
    %c0_i32_0 = arith.constant 0 : i32
    %c0_i32_1 = arith.constant 0 : i32
    return %c0_i32, %c0_i32_0 : i32, i32
  }
  func.func @transform_9(%arg0: i32) -> (i32, i32) {
    %c0_i32 = arith.constant 0 : i32
    %c0_i32_0 = arith.constant 0 : i32
    return %c0_i32, %arg0 : i32, i32
  }
}

</mosaic_0001>

<bundles_post_ra>
// kernel: tpu_custom_call.1
= control target key start
LH: loop header
LB: loop body
LE: loop exit
PB: predicated region body
PF: predicated region fallthrough
CT: control target
= control target key end

     0   :  { %s564_s0 = inlined_call_operand.vmem [shape: f32[8,16], index: 0, kind: input, shape index: {}]   ;;  %s565_s1 = inlined_call_operand.vmem [shape: f32[8,4], index: 1, kind: input, shape index: {}]   ;;  %s566_s2 = inlined_call_operand.vmem [shape: bf16[16,128], index: 2, kind: input, shape index: {}]   ;;  %s567_s3 = inlined_call_operand.vmem [shape: bf16[4,128], index: 3, kind: input, shape index: {}]   ;;  %s568_s4 = inlined_call_operand.vmem [shape: f32[1,128], index: 4, kind: input, shape index: {}]   ;;  %s569_s5 = inlined_call_operand.hbm [shape: bf16[128,128], index: 5, kind: input, shape index: {}]   ;;  %s570_s6 = inlined_call_operand.vmem [shape: f32[1,128], index: 6, kind: input, shape index: {}]   ;;  %s571_s7 = inlined_call_operand.vmem [shape: bf16[1,128], index: 7, kind: input, shape index: {}]   ;;  %s572_s8 = inlined_call_operand.<no memory space> [shape: f32[1,1], index: 8, kind: input, shape index: {}]   ;;  %s573_s9 = inlined_call_operand.hbm [shape: f32[1,8], index: 9, kind: output, shape index: {}]  }
   0x1   :  { %v14_v0 = vstv %s572_s8 }
   0x2   :  { %15 = vst [vmem:[#allocation2] sm:$0x1] %v14_v0 }
   0x3   :  { %16 = vsyncpa [#allocation4], 0 }
   0x4   :  { %17 = vsyncpa [#allocation5], 0  ;;  %s473_s11 = smov [#allocation3]  }
   0x5   :  { %s33_s12 = sshll.u32 %s473_s11, 4  ;;  %s34_s12 = int_to_ptr.vmem [resolvable:$true] %s33_s12 }
   0x6   :  { %s437_s13 = scalar_lea.vmem %s34_s12, 1024  ;;  %p442_p1 = scmp.lt.s32.totalorder %s34_s12, %s34_s12 }
   0x7   :  { %p438_p0 = scmp.ne.s32.totalorder %s34_s12, %s437_s13  ;;  %p443_p2 = scmp.lt.s32.totalorder %s437_s13, %s437_s13 }
   0x9   :  { %p444_p3 = por %p443_p2, %p442_p1 }
   0xb   :  { %p445_p4 = pnand %p444_p3, %p438_p0 }
   0xd   :  { %448 = shalt.err (!%p445_p4)
}
   0xe   :  { %s474_s14 = smov 64   ;;  %s475_s15 = smov 4  }
   0xf   :  { %39 = dma.hbm_to_vmem [thread:$0]  %s569_s5, 1024, %s34_s12, [#allocation4], %s474_s14, %s474_s14, %s475_s15  }
  0x10   :  { %469 = dma.done.wait [#allocation4], 1024  }
  0x11   :  { %470 = vsyncadd [#allocation4], 4294966272  ;;  %v476_v1 = vmov 0.0   ;;  %vm477_vm0 = vmmov 0   ;;  %vm61_vm1 = vcmask 1041408   ;;  %v52_v3 = vld [vmem:[%s565_s1] sm:$0xff]  ;;  %v285_v41 = vlaneseq }
  0x12   :  { %374 = vmatprep.subr.bf16.mxu1 %v476_v1  ;;  %376 = vmatprep.mubr.msk.bf16.mxu1 %vm477_vm0, %v476_v1  ;;  %v56_v2 = vld [vmem:[%s567_s3] sm:$0x3]  ;;  %v53_v5 = vpack.c.bf16 %v52_v3, %v52_v3  ;;  %vm57_vm2 = vcmask 31744   ;;  %v422_v8 = vld [vmem:[#allocation3 + $0x30] sm:$0xff]   ;;  %v423_v10 = vld [vmem:[#allocation3 + $0x28] sm:$0xff]   ;;  %vm111_vm3 = vcmask 130048  }
  0x13   :  { %386 = vmatprep.subr.bf16.mxu0 %v476_v1  ;;  %402 = vmatprep.mubr.msk.bf16.mxu0 %vm477_vm0, %v476_v1  ;;  %v63_v4 = vsel %vm61_vm1, %v56_v2, 0  ;;  %v420_v6 = vld [vmem:[%s566_s2] sm:$0xff]   ;;  %v426_v14 = vld [vmem:[#allocation3 + $0x10] sm:$0xff]   ;;  %v427_v15 = vld [vmem:[#allocation3 + $0x8] sm:$0xff]   ;;  %v478_v31 = vmov 0   ;;  %v286_v42 = vshrl.u32 %v285_v41, 7 }
  0x14   :  { %375 = vmatpush3.bf16.msra.mxu1 %v63_v4  ;;  %v421_v7 = vld [vmem:[#allocation3 + $0x38] sm:$0xff]   ;;  %v424_v12 = vld [vmem:[#allocation3 + $0x20] sm:$0xff]   ;;  %419 = vset.pattern.permute.xlu0 %v478_v31  ;;  %s479_s25 = smov [#allocation6]   ;;  %vm329_vm4 = vcmask 57344  }
  0x15   :  { %380 = vmatprep.subr.bf16.mxu1 %v476_v1  ;;  %387 = vmatpush3.bf16.msra.mxu0 %v421_v7  ;;  %v50_v9 = vld [vmem:[%s564_s0] sm:$0xff]  ;;  %v287_v43 = vsub.s32 0, %v286_v42 }
  0x16   :  { %388 = vmatprep.subr.bf16.mxu0 %v476_v1  ;;  %v51_v11 = vpack.c.bf16 %v50_v9, %v50_v9  ;;  %v425_v13 = vld [vmem:[#allocation3 + $0x18] sm:$0xff]   ;;  %v428_v16 = vld [vmem:[#allocation3] sm:$0xff]  }
  0x17   :  { %377 = vmatmul.mubr.msk.bf16.vlgmr.msra.gmra.mxu1 %vm57_vm2, %v53_v5  ;;  %v349_v22 = vld [vmem:[%s568_s4] ss:$0 sm:$0xff] }
  0x18   :  { %381 = vmatpush3.bf16.msra.mxu1 %v420_v6  ;;  %382 = vmatprep.mubr.msk.bf16.mxu1 %vm477_vm0, %v476_v1  ;;  %v279_v30 = vld [vmem:[#allocation2] sm:$0x1] }
  0x19   :  { %406 = vmatprep.subr.bf16.mxu1 %v476_v1  ;;  %389 = vmatpush3.bf16.msra.mxu0 %v422_v8  ;;  %v350_v32 = vld [vmem:[%s570_s6] ss:$0 sm:$0xff]  ;;  %s337_s6 = sshll.u32 %s479_s25, 4  ;;  %s338_s6 = int_to_ptr.vmem [resolvable:$true] %s337_s6 }
  0x1a   :  { %390 = vmatprep.subr.bf16.mxu0 %v476_v1  ;;  %282 = vperm.xlu0 %419, %v279_v30   ;;  %v277_v40 = vld [vmem:[%s571_s7] sm:$0x1]  ;;  %s449_s26 = scalar_lea.vmem %s338_s6, 16  ;;  %s453_s27 = scalar_lea.vmem %s338_s6, 32 }
  0x1b   :  { %p450_p5 = scmp.ne.s32.totalorder %s338_s6, %s449_s26  ;;  %p454_p6 = scmp.lt.s32.totalorder %s338_s6, %s338_s6 }
  0x1c   :  { %p455_p7 = scmp.lt.s32.totalorder %s453_s27, %s449_s26 }
  0x1d   :  { %391 = vmatpush3.bf16.msra.mxu0 %v423_v10 }
  0x1e   :  { %392 = vmatprep.subr.bf16.mxu0 %v476_v1  ;;  %p456_p8 = por %p455_p7, %p454_p6 }
  0x1f   :  { %383 = vmatmul.mubr.msk.bf16.vlgmr.msra.gmra.mxu1 %vm111_vm3, %v51_v11 }
  0x20   :  { %408 = vmatprep.mubr.msk.bf16.mxu1 %vm477_vm0, %v476_v1  ;;  %p457_p9 = pnand %p456_p8, %p450_p5 }
  0x21   :  { %393 = vmatpush3.bf16.msra.mxu0 %v424_v12 }
  0x22   :  { %394 = vmatprep.subr.bf16.mxu0 %v476_v1 }
  0x25   :  { %395 = vmatpush3.bf16.msra.mxu0 %v425_v13 }
  0x26   :  { %396 = vmatprep.subr.bf16.mxu0 %v476_v1 }
  0x29   :  { %397 = vmatpush3.bf16.msra.mxu0 %v426_v14 }
  0x2a   :  { %398 = vmatprep.subr.bf16.mxu0 %v476_v1 }
  0x2d   :  { %399 = vmatpush3.bf16.msra.mxu0 %v427_v15 }
  0x2e   :  { %400 = vmatprep.subr.bf16.mxu0 %v476_v1 }
  0x31   :  { %401 = vmatpush3.bf16.msra.mxu0 %v428_v16 }
  0x95   :  { %v283_v44 = vpop.permute.xlu0 %282 }
  0x96   :  { %v288_v45 = vrot.slane %v283_v44, %v287_v43 }
  0xd7   :  { %v99_v17 = vpop.f32.mrf.mxu1 }
  0xd9   :  { %v378_v18 = vpop.f32.mrf.mxu1 }
  0xdb   :  { %v102_v19 = vpop.f32.mrf.mxu1 }
  0xdd   :  { %v379_v20 = vpop.f32.mrf.mxu1 }
  0xdf   :  { %v149_v21 = vpop.f32.mrf.mxu1 }
  0xe0   :  { %v150_v23 = vadd.f32 %v149_v21, %v99_v17 }
  0xe1   :  { %v384_v24 = vpop.f32.mrf.mxu1 }
  0xe2   :  { %v162_v25 = vadd.f32 %v349_v22, %v150_v23 }
  0xe3   :  { %v152_v26 = vpop.f32.mrf.mxu1 }
  0xe4   :  { %v163_v27 = vmax.f32 %v162_v25, 0.0 }
  0xe5   :  { %v385_v28 = vpop.f32.mrf.mxu1 }
  0xe6   :  { %v164_v29 = vpack.c.bf16 %v163_v27, %v163_v27 }
  0xe8   :  { %403 = vmatmul.mubr.bf16.vlgmr.msra.gmra.mxu0 %v164_v29 }
 0x1a8   :  { %v270_v33 = vpop.f32.mrf.mxu0 }
 0x1a9   :  { %v271_v34 = vadd.f32 %v350_v32, %v270_v33 }
 0x1aa   :  { %v404_v35 = vpop.f32.mrf.mxu0 }
 0x1ab   :  { %v276_v36 = vmax.f32 %v271_v34, 0.0 }
 0x1ac   :  { %v273_v37 = vpop.f32.mrf.mxu0 }
 0x1ad   :  { %v278_v38 = vpack.c.bf16 %v276_v36, %v276_v36 }
 0x1ae   :  { %v405_v39 = vpop.f32.mrf.mxu0 }
 0x1af   :  { %407 = vmatpush3.bf16.xpose.msra.mxu1 %v278_v38 }
 0x1b6   :  { %409 = vmatmul.mubr.bf16.vlgmr.msra.gmra.mxu1 %v277_v40 }
 0x276   :  { %v323_v46 = vpop.f32.mrf.mxu1 }
 0x277   :  { %v324_v47 = vadd.f32 %v323_v46, %v288_v45 }
 0x278   :  { %v410_v48 = vpop.f32.mrf.mxu1 }
 0x279   :  { %330 = vst.msk [vmem:[#allocation6] sm:$0x1] %vm329_vm4, %v324_v47 }
 0x27a   :  { %v326_v49 = vpop.f32.mrf.mxu1 }
 0x27b   :  { %460 = shalt.err (!%p457_p9)
}
 0x27c   :  { %340 = dma.vmem_to_hbm [thread:$0]  %s338_s6, 16, %s573_s9, [#allocation5]   ;;  %v411_v50 = vpop.f32.mrf.mxu1 }
 0x27d   :  { %471 = dma.done.wait [#allocation5], 16  }
 0x27e   :  { %472 = vsyncadd [#allocation5], 4294967280 }
 0x27f   :  { %344 = vsyncpa [#allocation4], 1 }
 0x280   :  { %345 = vsyncpa [#allocation5], 1 }

</bundles_post_ra>
